<compile_context>
chip_gen: v7x
topology: tpu7x:2x2x1
jax: 0.10.0
libtpu: 0.0.40
codegen_flags: <defaults>
</compile_context>

<pallas_src>
import jax
import jax.numpy as jnp
from jax.experimental import pallas as pl
from jax.experimental.pallas import tpu as pltpu


def _round_up(x, m):
    return (x + m - 1) // m * m


def _se_linear_kernel(x_ref, xse_ref, w1_ref, b1_ref, w2_ref, b2_ref, o_ref):
    # x_ref, xse_ref, o_ref : (TILE_ROWS, Cp)  row tiles, channels on lanes
    # w1_ref, w2_ref        : (Cp, Cp)         pre-transposed to (in, out)
    # b1_ref, b2_ref        : (1, Cp)          float32
    xse = xse_ref[...]

    # conv_reduce + ReLU  (canonical contraction: no in-kernel weight transpose)
    h = jnp.dot(xse, w1_ref[...], preferred_element_type=jnp.float32)
    h = jnp.maximum(h + b1_ref[...], 0.0)

    # conv_expand + sigmoid gate (f32 accumulation on MXU, sigmoid on the EUP)
    g = jnp.dot(h.astype(w2_ref.dtype), w2_ref[...],
                preferred_element_type=jnp.float32)
    g = jax.nn.sigmoid(g + b2_ref[...])

    # Gate x in its own dtype (bf16 multiply on v6e/v7x when x is bf16).
    o_ref[...] = x_ref[...] * g.astype(o_ref.dtype)


def se_layer_linear_ref(x, x_se, w1, b1, w2, b2):
    """Pure-JAX reference mirroring the PyTorch forward."""
    h = jnp.maximum(x_se @ w1.T + b1, 0.0)
    g = jax.nn.sigmoid(h @ w2.T + b2)
    return x * g


def _vmem_capacity_bytes():
    try:
        return int(getattr(pltpu.get_tpu_info(), "vmem_capacity_bytes"))
    except Exception:
        return 64 << 20  # conservative default (v7x per-TensorCore)


def se_layer_linear(x, x_se, w1, b1, w2, b2, *, tile_rows=None,
                    small_fallback=True):
    """SELayer_Linear forward.

    x, x_se: (B, S, C); w1, w2: (C, C) PyTorch (out, in) weights; b1, b2: (C,).
    """
    B, S, C = x.shape
    assert x_se.shape == (B, S, C)
    rows = B * S

    # Small-problem fast path: a fused XLA matmul beats Pallas launch/grid
    # overhead until row-tile DMAs reach a few hundred KiB.
    if small_fallback and rows * C < (1 << 14):
        return se_layer_linear_ref(x, x_se, w1, b1, w2, b2)

    itemsize = jnp.dtype(x.dtype).itemsize
    w_itemsize = jnp.dtype(w1.dtype).itemsize

    # Keep channels un-padded for C >= 128 (full-dim blocks are legal; only the
    # ragged lane tail of the store is masked). Pad to one lane group for tiny C.
    Cp = 128 if C < 128 else C
    pad_c = Cp - C

    x2 = x.reshape(rows, C)
    xse2 = x_se.reshape(rows, C)
    w1t = w1.T                       # (in, out): one-time transpose in HBM
    w2t = w2.T
    b1p = b1.astype(jnp.float32)
    b2p = b2.astype(jnp.float32)
    if pad_c:
        x2 = jnp.pad(x2, ((0, 0), (0, pad_c)))
        xse2 = jnp.pad(xse2, ((0, 0), (0, pad_c)))
        w1t = jnp.pad(w1t, ((0, pad_c), (0, pad_c)))
        w2t = jnp.pad(w2t, ((0, pad_c), (0, pad_c)))
        b1p = jnp.pad(b1p, (0, pad_c))
        b2p = jnp.pad(b2p, (0, pad_c))
    b1p = b1p.reshape(1, Cp)
    b2p = b2p.reshape(1, Cp)

    # Resident (single-buffered) weight + bias VMEM footprint.
    w_bytes = 2 * Cp * Cp * w_itemsize + 2 * 8 * Cp * 4

    vmem_cap = _vmem_capacity_bytes()

    if tile_rows is None:
        # Row tiles as big as the generation-dependent VMEM budget allows, but
        # never far past the problem size, and >= 2 grid steps whenever rows
        # allow it so v7x can shard tiles across both TensorCores.
        budget = max(int(vmem_cap * 0.7) - w_bytes, 4 << 20)
        per_row = 3 * 2 * Cp * itemsize            # x, x_se, out double-buffered
        cap = max(128, (budget // per_row) // 128 * 128)
        tile_rows = int(min(2048, cap, max(128, _round_up(rows, 128))))
        if rows > 256 and pl.cdiv(rows, tile_rows) < 2:
            tile_rows = max(128, _round_up(pl.cdiv(rows, 2), 128))
    assert tile_rows % 8 == 0, "tile_rows must be a multiple of 8"

    num_tiles = pl.cdiv(rows, tile_rows)

    vmem_needed = 3 * 2 * tile_rows * Cp * itemsize + w_bytes
    vmem_limit = int(min(max(int(vmem_needed * 1.25) + (2 << 20), 32 << 20),
                         int(vmem_cap * 0.95)))

    cost = pl.CostEstimate(
        flops=2 * 2 * rows * Cp * Cp,              # two (rows,Cp)x(Cp,Cp) matmuls
        transcendentals=rows * Cp,                 # sigmoid
        bytes_accessed=(3 * rows * Cp * itemsize
                        + 2 * Cp * Cp * w_itemsize + 2 * Cp * 4),
    )

    row_spec = pl.BlockSpec((tile_rows, Cp), lambda i: (i, 0))
    # Grid-invariant operands: single-buffer so they don't double in VMEM.
    w_spec = pl.BlockSpec((Cp, Cp), lambda i: (0, 0), pipeline_mode=pl.Buffered(1))
    b_spec = pl.BlockSpec((1, Cp), lambda i: (0, 0), pipeline_mode=pl.Buffered(1))

    out = pl.pallas_call(
        _se_linear_kernel,
        out_shape=jax.ShapeDtypeStruct((rows, Cp), x.dtype),
        grid_spec=pltpu.PrefetchScalarGridSpec(
            num_scalar_prefetch=0,
            grid=(num_tiles,),
            in_specs=[row_spec, row_spec, w_spec, b_spec, w_spec, b_spec],
            out_specs=row_spec,
        ),
        compiler_params=pltpu.CompilerParams(
            dimension_semantics=("parallel",),     # row tiles shard across TCs
            vmem_limit_bytes=vmem_limit),
        cost_estimate=cost,
    )(x2, xse2, w1t, b1p, w2t, b2p)

    if pad_c:
        out = out[:, :C]
    return out.reshape(B, S, C)


def _make_inputs(B, S, C, key):
    kx, kse, kw1, kb1, kw2, kb2 = jax.random.split(key, 6)
    bound = float(C) ** -0.5
    x = jax.random.normal(kx, (B, S, C), dtype=jnp.float32)
    x_se = jax.random.normal(kse, (B, S, C), dtype=jnp.float32)
    # nn.Linear(channels, channels): weight (out, in), bias (out,).
    w1 = jax.random.uniform(kw1, (C, C), minval=-bound, maxval=bound, dtype=jnp.float32)
    b1 = jax.random.uniform(kb1, (C,), minval=-bound, maxval=bound, dtype=jnp.float32)
    w2 = jax.random.uniform(kw2, (C, C), minval=-bound, maxval=bound, dtype=jnp.float32)
    b2 = jax.random.uniform(kb2, (C,), minval=-bound, maxval=bound, dtype=jnp.float32)
    return x, x_se, w1, b1, w2, b2


if __name__ == "__main__":
    key = jax.random.PRNGKey(0)
    k1, k2 = jax.random.split(key)

    # 1) Tiny shape, Pallas path forced: exercises the C<128 lane padding and
    #    the ragged last row block (rows=16 < tile_rows).
    args = _make_inputs(2, 8, 32, k1)
    out = jax.block_until_ready(se_layer_linear(*args, small_fallback=False))
    ref = se_layer_linear_ref(*args)
    assert out.shape == ref.shape
    assert jnp.allclose(out, ref, atol=1e-4, rtol=1e-4), "tiny-shape mismatch"

    # Default call on the same tiny shape takes the XLA fast path.
    out_fast = jax.block_until_ready(se_layer_linear(*args))
    assert jnp.allclose(out_fast, ref, atol=1e-5, rtol=1e-5), "fast-path mismatch"

    # 2) PETR-like shape: lane-dense un-padded channels, multi-step parallel
    #    grid, single-buffered resident weights.
    args = _make_inputs(2, 256, 256, k2)
    out = jax.block_until_ready(se_layer_linear(*args))
    ref = se_layer_linear_ref(*args)
    assert out.shape == ref.shape
    # Loose-ish tolerance guards against backend default matmul-precision
    # differences; real bugs (wrong transpose / missing bias) are O(0.1+).
    assert jnp.allclose(out, ref, atol=5e-3, rtol=5e-3), "PETR-shape mismatch"

    print("KERNEL_OK")
</pallas_src>

<mosaic_0001>
module attributes {stable_mosaic.version = 11 : i64} {
  func.func @_se_linear_kernel(%arg0: i32, %arg1: memref<128x128xf32, #tpu.memory_space<vmem>>, %arg2: memref<128x128xf32, #tpu.memory_space<vmem>>, %arg3: memref<128x128xf32, #tpu.memory_space<vmem>>, %arg4: memref<1x128xf32, #tpu.memory_space<vmem>>, %arg5: memref<128x128xf32, #tpu.memory_space<vmem>>, %arg6: memref<1x128xf32, #tpu.memory_space<vmem>>, %arg7: memref<128x128xf32, #tpu.memory_space<vmem>>) attributes {dimension_semantics = [#tpu.dimension_semantics<parallel>], iteration_bounds = array<i64: 1>, scalar_prefetch = 0 : i64, scratch_operands = 0 : i64, tpu.core_type = #tpu.core_type<tc>, window_params = [{transform_indices = @transform_0, window_bounds = array<i64: 128, 128>}, {transform_indices = @transform_1, window_bounds = array<i64: 128, 128>}, {pipeline_mode = #tpu.pipeline_mode<synchronous>, transform_indices = @transform_2, window_bounds = array<i64: 128, 128>}, {pipeline_mode = #tpu.pipeline_mode<synchronous>, transform_indices = @transform_3, window_bounds = array<i64: 1, 128>}, {pipeline_mode = #tpu.pipeline_mode<synchronous>, transform_indices = @transform_4, window_bounds = array<i64: 128, 128>}, {pipeline_mode = #tpu.pipeline_mode<synchronous>, transform_indices = @transform_5, window_bounds = array<i64: 1, 128>}, {transform_indices = @transform_6, window_bounds = array<i64: 128, 128>}]} {
    %c0 = arith.constant 0 : index
    %c0_0 = arith.constant 0 : index
    %0 = vector.load %arg2[%c0, %c0_0] : memref<128x128xf32, #tpu.memory_space<vmem>>, vector<128x128xf32>
    %c0_1 = arith.constant 0 : index
    %c0_2 = arith.constant 0 : index
    %1 = vector.load %arg3[%c0_1, %c0_2] : memref<128x128xf32, #tpu.memory_space<vmem>>, vector<128x128xf32>
    %cst = arith.constant dense<0.000000e+00> : vector<128x128xf32>
    %2 = tpu.matmul %0, %1, %cst {dimension_numbers = #tpu.dot_dimension_numbers<[1], [0], [0], [1], [0, 0, 1, 1], [], []>} : vector<128x128xf32>, vector<128x128xf32>, vector<128x128xf32> -> vector<128x128xf32>
    %c0_3 = arith.constant 0 : index
    %c0_4 = arith.constant 0 : index
    %3 = vector.load %arg4[%c0_3, %c0_4] : memref<1x128xf32, #tpu.memory_space<vmem>>, vector<1x128xf32>
    %4 = vector.broadcast %3 : vector<1x128xf32> to vector<128x128xf32>
    %5 = arith.addf %2, %4 : vector<128x128xf32>
    %cst_5 = arith.constant 0.000000e+00 : f32
    %6 = vector.broadcast %cst_5 : f32 to vector<128x128xf32>
    %7 = arith.maximumf %5, %6 : vector<128x128xf32>
    %c0_6 = arith.constant 0 : index
    %c0_7 = arith.constant 0 : index
    %8 = vector.load %arg5[%c0_6, %c0_7] : memref<128x128xf32, #tpu.memory_space<vmem>>, vector<128x128xf32>
    %cst_8 = arith.constant dense<0.000000e+00> : vector<128x128xf32>
    %9 = tpu.matmul %7, %8, %cst_8 {dimension_numbers = #tpu.dot_dimension_numbers<[1], [0], [0], [1], [0, 0, 1, 1], [], []>} : vector<128x128xf32>, vector<128x128xf32>, vector<128x128xf32> -> vector<128x128xf32>
    %c0_9 = arith.constant 0 : index
    %c0_10 = arith.constant 0 : index
    %10 = vector.load %arg6[%c0_9, %c0_10] : memref<1x128xf32, #tpu.memory_space<vmem>>, vector<1x128xf32>
    %11 = vector.broadcast %10 : vector<1x128xf32> to vector<128x128xf32>
    %12 = arith.addf %9, %11 : vector<128x128xf32>
    %13 = arith.negf %12 : vector<128x128xf32>
    %14 = math.exp %13 : vector<128x128xf32>
    %cst_11 = arith.constant 1.000000e+00 : f32
    %15 = vector.broadcast %cst_11 : f32 to vector<128x128xf32>
    %16 = arith.addf %15, %14 : vector<128x128xf32>
    %17 = arith.divf %15, %16 : vector<128x128xf32>
    %c0_12 = arith.constant 0 : index
    %c0_13 = arith.constant 0 : index
    %18 = vector.load %arg1[%c0_12, %c0_13] : memref<128x128xf32, #tpu.memory_space<vmem>>, vector<128x128xf32>
    %19 = arith.mulf %18, %17 : vector<128x128xf32>
    %c0_14 = arith.constant 0 : index
    %c0_15 = arith.constant 0 : index
    %20 = vector.load %arg7[%c0_14, %c0_15] : memref<128x128xf32, #tpu.memory_space<vmem>>, vector<128x128xf32>
    tpu.vector_store %arg7[%c0_14, %c0_15], %19 {strides = array<i32>} : memref<128x128xf32, #tpu.memory_space<vmem>>, vector<128x128xf32>,
    return
  }
  func.func @transform_0(%arg0: i32) -> (i32, i32) {
    %c0_i32 = arith.constant 0 : i32
    %c0_i32_0 = arith.constant 0 : i32
    return %arg0, %c0_i32 : i32, i32
  }
  func.func @transform_1(%arg0: i32) -> (i32, i32) {
    %c0_i32 = arith.constant 0 : i32
    %c0_i32_0 = arith.constant 0 : i32
    return %arg0, %c0_i32 : i32, i32
  }
  func.func @transform_2(%arg0: i32) -> (i32, i32) {
    %c0_i32 = arith.constant 0 : i32
    %c0_i32_0 = arith.constant 0 : i32
    %c0_i32_1 = arith.constant 0 : i32
    return %c0_i32, %c0_i32_0 : i32, i32
  }
  func.func @transform_3(%arg0: i32) -> (i32, i32) {
    %c0_i32 = arith.constant 0 : i32
    %c0_i32_0 = arith.constant 0 : i32
    %c0_i32_1 = arith.constant 0 : i32
    return %c0_i32, %c0_i32_0 : i32, i32
  }
  func.func @transform_4(%arg0: i32) -> (i32, i32) {
    %c0_i32 = arith.constant 0 : i32
    %c0_i32_0 = arith.constant 0 : i32
    %c0_i32_1 = arith.constant 0 : i32
    return %c0_i32, %c0_i32_0 : i32, i32
  }
  func.func @transform_5(%arg0: i32) -> (i32, i32) {
    %c0_i32 = arith.constant 0 : i32
    %c0_i32_0 = arith.constant 0 : i32
    %c0_i32_1 = arith.constant 0 : i32
    return %c0_i32, %c0_i32_0 : i32, i32
  }
  func.func @transform_6(%arg0: i32) -> (i32, i32) {
    %c0_i32 = arith.constant 0 : i32
    %c0_i32_0 = arith.constant 0 : i32
    return %arg0, %c0_i32 : i32, i32
  }
}

</mosaic_0001>

<bundles_post_ra>
// kernel: tpu_custom_call.1
= control target key start
LH: loop header
LB: loop body
LE: loop exit
PB: predicated region body
PF: predicated region fallthrough
CT: control target
= control target key end

     0   :  { %11 = vsyncpa [#allocation3], 0  ;;  %s1205_s0 = inlined_call_operand.hbm [shape: f32[16,128], index: 0, kind: input, shape index: {}]   ;;  %s1206_s1 = inlined_call_operand.hbm [shape: f32[16,128], index: 1, kind: input, shape index: {}]   ;;  %s1207_s2 = inlined_call_operand.hbm [shape: f32[128,128], index: 2, kind: input, shape index: {}]   ;;  %s1208_s3 = inlined_call_operand.vmem [shape: f32[1,128], index: 3, kind: input, shape index: {}]   ;;  %s1209_s4 = inlined_call_operand.hbm [shape: f32[128,128], index: 4, kind: input, shape index: {}]   ;;  %s1210_s5 = inlined_call_operand.vmem [shape: f32[1,128], index: 5, kind: input, shape index: {}]   ;;  %s1211_s6 = inlined_call_operand.hbm [shape: f32[16,128], index: 6, kind: output, shape index: {}]  }
   0x1   :  { %12 = vsyncpa [#allocation6], 0 }
   0x2   :  { %13 = vsyncpa [#allocation9], 0 }
   0x3   :  { %14 = vsyncpa [#allocation4], 0 }
   0x4   :  { %19 = vsyncadd [#allocation3], 1792  ;;  %s1057_s21 = smov [#allocation2]   ;;  %s939_s25 = scalar_lea.hbm %s1205_s0, 256 }
   0x5   :  { %s20_s22 = sshll.u32 %s1057_s21, 4  ;;  %p940_p0 = scmp.ne.s32.totalorder %s1205_s0, %s939_s25  ;;  %s21_s22 = int_to_ptr.vmem [resolvable:$true] %s20_s22 }
   0x6   :  { %p943_p1 = scmp.lt.u32.totalorder %s939_s25, %s1205_s0 }
   0x8   :  { %p945_p2 = pnand %p943_p1, %p940_p0 }
   0xa   :  { %948 = shalt.err (!%p945_p2)
}
   0xb   :  { %s949_s30 = scalar_lea.vmem %s21_s22, 256  ;;  %s953_s7 = scalar_lea.vmem %s21_s22, 2048 }
   0xc   :  { %p950_p3 = scmp.ne.s32.totalorder %s21_s22, %s949_s30  ;;  %p954_p4 = scmp.lt.s32.totalorder %s21_s22, %s21_s22 }
   0xd   :  { %p955_p5 = scmp.lt.s32.totalorder %s953_s7, %s949_s30 }
   0xf   :  { %p956_p6 = por %p955_p5, %p954_p4 }
  0x11   :  { %p957_p7 = pnand %p956_p6, %p950_p3 }
  0x13   :  { %960 = shalt.err (!%p957_p7)
}
  0x14   :  { %s1058_s8 = smov 128   ;;  %s1059_s9 = smov 8  }
  0x15   :  { %26 = dma.hbm_to_vmem [thread:$0]  %s1205_s0, 256, %s21_s22, [#allocation3], %s1058_s8, %s1058_s8, %s1059_s9  }
  0x16   :  { %31 = vsyncadd [#allocation6], 1792  ;;  %s1060_s12 = smov [#allocation5]   ;;  %s1061_s14 = smov [#allocation7]  }
  0x17   :  { %s32_s13 = sshll.u32 %s1060_s12, 4  ;;  %s44_s15 = sshll.u32 %s1061_s14, 4  ;;  %s33_s13 = int_to_ptr.vmem [resolvable:$true] %s32_s13  ;;  %s1114_s15 = int_to_ptr.vmem [resolvable:$true] %s44_s15 }
  0x18   :  { %s961_s18 = scalar_lea.hbm %s1206_s1, 256 }
  0x19   :  { %p962_p8 = scmp.ne.s32.totalorder %s1206_s1, %s961_s18  ;;  %p965_p9 = scmp.lt.u32.totalorder %s961_s18, %s1206_s1 }
  0x1b   :  { %p967_p10 = pnand %p965_p9, %p962_p8 }
  0x1d   :  { %970 = shalt.err (!%p967_p10)
}
  0x1e   :  { %s971_s0 = scalar_lea.vmem %s33_s13, 256  ;;  %s975_s22 = scalar_lea.vmem %s33_s13, 2048 }
  0x1f   :  { %p972_p11 = scmp.ne.s32.totalorder %s33_s13, %s971_s0  ;;  %p976_p12 = scmp.lt.s32.totalorder %s33_s13, %s33_s13 }
  0x20   :  { %p977_p13 = scmp.lt.s32.totalorder %s975_s22, %s971_s0 }
  0x22   :  { %p978_p0 = por %p977_p13, %p976_p12 }
  0x24   :  { %p979_p1 = pnand %p978_p0, %p972_p11 }
  0x26   :  { %982 = shalt.err (!%p979_p1)
}
  0x27   :  { %38 = dma.hbm_to_vmem [thread:$0]  %s1206_s1, 256, %s33_s13, [#allocation6], %s1058_s8, %s1058_s8, %s1059_s9  }
  0x28   :  { %s983_s28 = scalar_lea.hbm %s1207_s2, 2048 }
  0x29   :  { %p984_p2 = scmp.ne.s32.totalorder %s1207_s2, %s983_s28  ;;  %p987_p3 = scmp.lt.u32.totalorder %s983_s28, %s1207_s2 }
  0x2b   :  { %p989_p4 = pnand %p987_p3, %p984_p2 }
  0x2d   :  { %992 = shalt.err (!%p989_p4)
}
  0x2e   :  { %s993_s11 = scalar_lea.vmem %s1114_s15, 2048  ;;  %p998_p6 = scmp.lt.s32.totalorder %s1114_s15, %s1114_s15 }
  0x2f   :  { %p994_p5 = scmp.ne.s32.totalorder %s1114_s15, %s993_s11  ;;  %p999_p7 = scmp.lt.s32.totalorder %s993_s11, %s993_s11 }
  0x31   :  { %p1000_p8 = por %p999_p7, %p998_p6 }
  0x33   :  { %p1001_p9 = pnand %p1000_p8, %p994_p5 }
  0x35   :  { %1004 = shalt.err (!%p1001_p9)
}
  0x36   :  { %50 = dma.hbm_to_vmem [thread:$0]  %s1207_s2, 2048, %s1114_s15, [#allocation6], %s1058_s8, %s1058_s8, %s1059_s9  }
  0x37   :  { %s1062_s13 = smov [#allocation8]   ;;  %s1005_s18 = scalar_lea.hbm %s1209_s4, 2048 }
  0x38   :  { %s58_s14 = sshll.u32 %s1062_s13, 4  ;;  %p1006_p10 = scmp.ne.s32.totalorder %s1209_s4, %s1005_s18  ;;  %s59_s14 = int_to_ptr.vmem [resolvable:$true] %s58_s14 }
  0x39   :  { %p1009_p11 = scmp.lt.u32.totalorder %s1005_s18, %s1209_s4 }
  0x3b   :  { %p1011_p12 = pnand %p1009_p11, %p1006_p10 }
  0x3d   :  { %1014 = shalt.err (!%p1011_p12)
}
  0x3e   :  { %s1015_s0 = scalar_lea.vmem %s59_s14, 2048  ;;  %p1020_p0 = scmp.lt.s32.totalorder %s59_s14, %s59_s14 }
  0x3f   :  { %p1016_p13 = scmp.ne.s32.totalorder %s59_s14, %s1015_s0  ;;  %p1021_p1 = scmp.lt.s32.totalorder %s1015_s0, %s1015_s0 }
  0x41   :  { %p1022_p2 = por %p1021_p1, %p1020_p0 }
  0x43   :  { %p1023_p3 = pnand %p1022_p2, %p1016_p13 }
  0x45   :  { %1026 = shalt.err (!%p1023_p3)
}
  0x46   :  { %64 = dma.hbm_to_vmem [thread:$0]  %s1209_s4, 2048, %s59_s14, [#allocation9], %s1058_s8, %s1058_s8, %s1059_s9  }
  0x47   :  { %1049 = dma.done.wait [#allocation3], 2048  }
  0x48   :  { %1050 = vsyncadd [#allocation3], 4294965248 }
  0x49   :  { %1051 = dma.done.wait [#allocation6], 4096  }
  0x4a   :  { %1052 = vsyncadd [#allocation6], 4294963200 }
  0x4b   :  { %1053 = dma.done.wait [#allocation9], 2048  }
  0x4c   :  { %1054 = vsyncadd [#allocation9], 4294965248  ;;  %v95_v0 = vld [vmem:[#allocation7] sm:$0xff]  ;;  %v96_v1 = vld [vmem:[#allocation7 + $0x8] sm:$0xff] }
  0x4d   :  { %v97_v2 = vld [vmem:[#allocation7 + $0x10] sm:$0xff]  ;;  %v804_v3 = vpack.c.bf16 %v96_v1, %v95_v0  ;;  %v98_v4 = vld [vmem:[#allocation7 + $0x18] sm:$0xff]  ;;  %v99_v6 = vld [vmem:[#allocation7 + $0x20] sm:$0xff] }
  0x4e   :  { %v808_v5 = vpack.c.bf16 %v98_v4, %v97_v2  ;;  %v100_v7 = vld [vmem:[#allocation7 + $0x28] sm:$0xff]  ;;  %v79_v9 = vld [vmem:[#allocation5] sm:$0xff]  ;;  %v101_v10 = vld [vmem:[#allocation7 + $0x30] sm:$0xff] }
  0x4f   :  { %805 = vmatprep.subr.bf16.mxu0 %v804_v3  ;;  %v812_v8 = vpack.c.bf16 %v100_v7, %v99_v6  ;;  %v102_v11 = vld [vmem:[#allocation7 + $0x38] sm:$0xff]  ;;  %724 = vmatprep.mubr.f32.mxu0 %v79_v9  ;;  %v103_v13 = vld [vmem:[#allocation7 + $0x40] sm:$0xff]  ;;  %v104_v14 = vld [vmem:[#allocation7 + $0x48] sm:$0xff] }
  0x50   :  { %807 = vmatpush3.bf16.msra.mxu0 %v804_v3  ;;  %v816_v12 = vpack.c.bf16 %v102_v11, %v101_v10  ;;  %v279_v15 = vld [vmem:[#allocation8] sm:$0xff]  ;;  %v280_v16 = vld [vmem:[#allocation8 + $0x8] sm:$0xff]  ;;  %v281_v17 = vld [vmem:[#allocation8 + $0x10] sm:$0xff]  ;;  %v820_v21 = vpack.c.bf16 %v104_v14, %v103_v13 }
  0x51   :  { %809 = vmatprep.subr.bf16.mxu0 %v808_v5  ;;  %v282_v18 = vld [vmem:[#allocation8 + $0x18] sm:$0xff]  ;;  %v836_v19 = vpack.c.bf16 %v280_v16, %v279_v15  ;;  %v283_v22 = vld [vmem:[#allocation8 + $0x20] sm:$0xff]  ;;  %v284_v23 = vld [vmem:[#allocation8 + $0x28] sm:$0xff] }
  0x52   :  { %v840_v20 = vpack.c.bf16 %v282_v18, %v281_v17  ;;  %v105_v24 = vld [vmem:[#allocation7 + $0x50] sm:$0xff]  ;;  %v106_v25 = vld [vmem:[#allocation7 + $0x58] sm:$0xff]  ;;  %v844_v26 = vpack.c.bf16 %v284_v23, %v283_v22  ;;  %v107_v30 = vld [vmem:[#allocation7 + $0x60] sm:$0xff] }
  0x53   :  { %837 = vmatprep.subr.bf16.mxu1 %v836_v19  ;;  %v824_v27 = vpack.c.bf16 %v106_v25, %v105_v24  ;;  %v285_v28 = vld [vmem:[#allocation8 + $0x30] sm:$0xff]  ;;  %v286_v29 = vld [vmem:[#allocation8 + $0x38] sm:$0xff]  ;;  %v108_v31 = vld [vmem:[#allocation7 + $0x68] sm:$0xff] }
  0x54   :  { %811 = vmatpush3.bf16.msra.mxu0 %v808_v5  ;;  %839 = vmatpush3.bf16.msra.mxu1 %v836_v19  ;;  %v848_v32 = vpack.c.bf16 %v286_v29, %v285_v28  ;;  %v828_v33 = vpack.c.bf16 %v108_v31, %v107_v30  ;;  %v287_v34 = vld [vmem:[#allocation8 + $0x40] sm:$0xff]  ;;  %v288_v35 = vld [vmem:[#allocation8 + $0x48] sm:$0xff]  ;;  %v109_v36 = vld [vmem:[#allocation7 + $0x70] sm:$0xff] }
  0x55   :  { %813 = vmatprep.subr.bf16.mxu0 %v812_v8  ;;  %841 = vmatprep.subr.bf16.mxu1 %v840_v20  ;;  %v110_v37 = vld [vmem:[#allocation7 + $0x78] sm:$0xff]  ;;  %v852_v38 = vpack.c.bf16 %v288_v35, %v287_v34  ;;  %v289_v40 = vld [vmem:[#allocation8 + $0x50] sm:$0xff]  ;;  %v291_v43 = vld [vmem:[#allocation8 + $0x60] sm:$0xff] }
  0x56   :  { %v832_v39 = vpack.c.bf16 %v110_v37, %v109_v36  ;;  %v290_v41 = vld [vmem:[#allocation8 + $0x58] sm:$0xff]  ;;  %v292_v44 = vld [vmem:[#allocation8 + $0x68] sm:$0xff]  ;;  %v81_v47 = vld [vmem:[#allocation5 + $0x10] sm:$0xff] }
  0x57   :  { %v856_v42 = vpack.c.bf16 %v290_v41, %v289_v40  ;;  %v80_v45 = vld [vmem:[#allocation5 + $0x8] sm:$0xff]  ;;  %v860_v46 = vpack.c.bf16 %v292_v44, %v291_v43  ;;  %v82_v48 = vld [vmem:[#allocation5 + $0x18] sm:$0xff]  ;;  %v83_v49 = vld [vmem:[#allocation5 + $0x20] sm:$0xff] }
  0x58   :  { %815 = vmatpush3.bf16.msra.mxu0 %v812_v8  ;;  %843 = vmatpush3.bf16.msra.mxu1 %v840_v20  ;;  %v84_v50 = vld [vmem:[#allocation5 + $0x28] sm:$0xff]  ;;  %v85_v51 = vld [vmem:[#allocation5 + $0x30] sm:$0xff]  ;;  %v86_v52 = vld [vmem:[#allocation5 + $0x38] sm:$0xff] }
  0x59   :  { %817 = vmatprep.subr.bf16.mxu0 %v816_v12  ;;  %845 = vmatprep.subr.bf16.mxu1 %v844_v26  ;;  %v87_v53 = vld [vmem:[#allocation5 + $0x40] sm:$0xff]  ;;  %v88_v54 = vld [vmem:[#allocation5 + $0x48] sm:$0xff]  ;;  %v89_v55 = vld [vmem:[#allocation5 + $0x50] sm:$0xff] }
  0x5a   :  { %v90_v56 = vld [vmem:[#allocation5 + $0x58] sm:$0xff]  ;;  %v91_v57 = vld [vmem:[#allocation5 + $0x60] sm:$0xff]  ;;  %v92_v58 = vld [vmem:[#allocation5 + $0x68] sm:$0xff] }
  0x5b   :  { %v93_v59 = vld [vmem:[#allocation5 + $0x70] sm:$0xff]  ;;  %v94_v60 = vld [vmem:[#allocation5 + $0x78] sm:$0xff]  ;;  %v610_v0 = vld [vmem:[%s1208_s3] ss:$0 sm:$0xff] }
  0x5c   :  { %819 = vmatpush3.bf16.msra.mxu0 %v816_v12  ;;  %847 = vmatpush3.bf16.msra.mxu1 %v844_v26  ;;  %v293_v61 = vld [vmem:[#allocation8 + $0x70] sm:$0xff]  ;;  %v294_v62 = vld [vmem:[#allocation8 + $0x78] sm:$0xff] }
  0x5d   :  { %821 = vmatprep.subr.bf16.mxu0 %v820_v21  ;;  %849 = vmatprep.subr.bf16.mxu1 %v848_v32  ;;  %v864_v63 = vpack.c.bf16 %v294_v62, %v293_v61 }
  0x60   :  { %823 = vmatpush3.bf16.msra.mxu0 %v820_v21  ;;  %851 = vmatpush3.bf16.msra.mxu1 %v848_v32 }
  0x61   :  { %825 = vmatprep.subr.bf16.mxu0 %v824_v27  ;;  %853 = vmatprep.subr.bf16.mxu1 %v852_v38 }
  0x64   :  { %827 = vmatpush3.bf16.msra.mxu0 %v824_v27  ;;  %855 = vmatpush3.bf16.msra.mxu1 %v852_v38 }
  0x65   :  { %829 = vmatprep.subr.bf16.mxu0 %v828_v33  ;;  %857 = vmatprep.subr.bf16.mxu1 %v856_v42 }
  0x68   :  { %831 = vmatpush3.bf16.msra.mxu0 %v828_v33  ;;  %859 = vmatpush3.bf16.msra.mxu1 %v856_v42 }
  0x69   :  { %833 = vmatprep.subr.bf16.mxu0 %v832_v39  ;;  %861 = vmatprep.subr.bf16.mxu1 %v860_v46 }
  0x6c   :  { %835 = vmatpush3.bf16.msra.mxu0 %v832_v39  ;;  %863 = vmatpush3.bf16.msra.mxu1 %v860_v46 }
  0x6d   :  { %865 = vmatprep.subr.bf16.mxu1 %v864_v63 }
  0x6f   :  { %725 = vmatmul.mubr.f32.vlgmr.msra.gmra.mrb[0].mxu0 %v80_v45 }
  0x70   :  { %727 = vmatprep.mubr.f32.mxu0 %v81_v47  ;;  %867 = vmatpush3.bf16.msra.mxu1 %v864_v63 }
  0x73   :  { %728 = vmatmul.mubr.f32.gmra.mrb[2].mxu0 %v82_v48 }
  0x74   :  { %730 = vmatprep.mubr.f32.mxu0 %v83_v49  ;;  %v1172_v49 = vld [vmem:[%s1210_s5] ss:$0 sm:$0xff] }
  0x77   :  { %731 = vmatmul.mubr.f32.gmra.mrb[4].mxu0 %v84_v50 }
  0x78   :  { %733 = vmatprep.mubr.f32.mxu0 %v85_v51 }
  0x7b   :  { %734 = vmatmul.mubr.f32.gmra.mrb[6].mxu0 %v86_v52 }
  0x7c   :  { %736 = vmatprep.mubr.f32.mxu0 %v87_v53 }
  0x7f   :  { %737 = vmatmul.mubr.f32.gmra.mrb[8].mxu0 %v88_v54 }
  0x80   :  { %739 = vmatprep.mubr.f32.mxu0 %v89_v55 }
  0x83   :  { %740 = vmatmul.mubr.f32.gmra.mrb[10].mxu0 %v90_v56 }
  0x84   :  { %742 = vmatprep.mubr.f32.mxu0 %v91_v57 }
  0x87   :  { %743 = vmatmul.mubr.f32.gmra.mrb[12].mxu0 %v92_v58 }
  0x88   :  { %745 = vmatprep.mubr.f32.mxu0 %v93_v59 }
  0x8b   :  { %746 = vmatmul.mubr.f32.gmra.mrb[14].mxu0 %v94_v60 }
 0x142   :  { %v726_v1 = vpop.f32.mrb[0].mxu0 }
 0x143   :  { %v190_v2 = vadd.f32 %v726_v1, %v610_v0  ;;  %v184_v3 = vpop.f32.mrb[1].mxu0 }
 0x144   :  { %v185_v4 = vadd.f32 %v610_v0, %v184_v3 }
 0x145   :  { %v264_v7 = vmax.f32 %v190_v2, 0.0 }
 0x146   :  { %v729_v5 = vpop.f32.mrb[2].mxu0  ;;  %v263_v6 = vmax.f32 %v185_v4, 0.0 }
 0x147   :  { %v200_v8 = vadd.f32 %v729_v5, %v610_v0  ;;  %v194_v9 = vpop.f32.mrb[3].mxu0 }
 0x148   :  { %v195_v10 = vadd.f32 %v610_v0, %v194_v9  ;;  %780 = vmatprep.mubr.f32.mxu1 %v263_v6 }
 0x149   :  { %781 = vmatmul.mubr.f32.vlgmr.msra.gmra.mrb[0].mxu1 %v264_v7  ;;  %v266_v13 = vmax.f32 %v200_v8, 0.0 }
 0x14a   :  { %v265_v11 = vmax.f32 %v195_v10, 0.0  ;;  %v732_v12 = vpop.f32.mrb[4].mxu0 }
 0x14b   :  { %v210_v14 = vadd.f32 %v732_v12, %v610_v0  ;;  %v204_v15 = vpop.f32.mrb[5].mxu0 }
 0x14c   :  { %v205_v16 = vadd.f32 %v610_v0, %v204_v15  ;;  %783 = vmatprep.mubr.f32.mxu1 %v265_v11 }
 0x14d   :  { %784 = vmatmul.mubr.f32.gmra.mrb[2].mxu1 %v266_v13  ;;  %v268_v19 = vmax.f32 %v210_v14, 0.0 }
 0x14e   :  { %v267_v17 = vmax.f32 %v205_v16, 0.0  ;;  %v735_v18 = vpop.f32.mrb[6].mxu0 }
 0x14f   :  { %v220_v20 = vadd.f32 %v735_v18, %v610_v0  ;;  %v214_v21 = vpop.f32.mrb[7].mxu0 }
 0x150   :  { %v215_v22 = vadd.f32 %v610_v0, %v214_v21  ;;  %786 = vmatprep.mubr.f32.mxu1 %v267_v17 }
 0x151   :  { %787 = vmatmul.mubr.f32.gmra.mrb[4].mxu1 %v268_v19  ;;  %v270_v25 = vmax.f32 %v220_v20, 0.0 }
 0x152   :  { %v269_v23 = vmax.f32 %v215_v22, 0.0  ;;  %v738_v24 = vpop.f32.mrb[8].mxu0 }
 0x153   :  { %v230_v26 = vadd.f32 %v738_v24, %v610_v0  ;;  %v224_v27 = vpop.f32.mrb[9].mxu0 }
 0x154   :  { %v225_v28 = vadd.f32 %v610_v0, %v224_v27  ;;  %789 = vmatprep.mubr.f32.mxu1 %v269_v23 }
 0x155   :  { %790 = vmatmul.mubr.f32.gmra.mrb[6].mxu1 %v270_v25  ;;  %v272_v31 = vmax.f32 %v230_v26, 0.0 }
 0x156   :  { %v271_v29 = vmax.f32 %v225_v28, 0.0  ;;  %v741_v30 = vpop.f32.mrb[10].mxu0 }
 0x157   :  { %v240_v32 = vadd.f32 %v741_v30, %v610_v0  ;;  %v234_v33 = vpop.f32.mrb[11].mxu0 }
 0x158   :  { %v235_v34 = vadd.f32 %v610_v0, %v234_v33  ;;  %792 = vmatprep.mubr.f32.mxu1 %v271_v29 }
 0x159   :  { %793 = vmatmul.mubr.f32.gmra.mrb[8].mxu1 %v272_v31  ;;  %v274_v37 = vmax.f32 %v240_v32, 0.0 }
 0x15a   :  { %v273_v35 = vmax.f32 %v235_v34, 0.0  ;;  %v744_v36 = vpop.f32.mrb[12].mxu0 }
 0x15b   :  { %v250_v38 = vadd.f32 %v744_v36, %v610_v0  ;;  %v244_v39 = vpop.f32.mrb[13].mxu0 }
 0x15c   :  { %v245_v40 = vadd.f32 %v610_v0, %v244_v39  ;;  %795 = vmatprep.mubr.f32.mxu1 %v273_v35 }
 0x15d   :  { %796 = vmatmul.mubr.f32.gmra.mrb[10].mxu1 %v274_v37  ;;  %v276_v43 = vmax.f32 %v250_v38, 0.0  ;;  %v544_v37 = vld [vmem:[#allocation2 + $0x8] sm:$0xff] }
 0x15e   :  { %v275_v41 = vmax.f32 %v245_v40, 0.0  ;;  %v747_v42 = vpop.f32.mrb[14].mxu0  ;;  %v543_v40 = vld [vmem:[#allocation2] sm:$0xff] }
 0x15f   :  { %v260_v44 = vadd.f32 %v747_v42, %v610_v0  ;;  %v254_v45 = vpop.f32.mrb[15].mxu0 }
 0x160   :  { %v255_v46 = vadd.f32 %v610_v0, %v254_v45  ;;  %798 = vmatprep.mubr.f32.mxu1 %v275_v41 }
 0x161   :  { %799 = vmatmul.mubr.f32.gmra.mrb[12].mxu1 %v276_v43  ;;  %v278_v48 = vmax.f32 %v260_v44, 0.0 }
 0x162   :  { %v277_v47 = vmax.f32 %v255_v46, 0.0 }
 0x164   :  { %801 = vmatprep.mubr.f32.mxu1 %v277_v47 }
 0x165   :  { %802 = vmatmul.mubr.f32.gmra.mrb[14].mxu1 %v278_v48 }
 0x21c   :  { %v782_v50 = vpop.f32.mrb[0].mxu1 }
 0x21d   :  { %v374_v51 = vadd.f32 %v782_v50, %v1172_v49  ;;  %v368_v52 = vpop.f32.mrb[1].mxu1 }
 0x21e   :  { %v369_v53 = vadd.f32 %v1172_v49, %v368_v52 }
 0x21f   :  { %v613_v54 = vmul.f32 -1.442695, %v374_v51 }
 0x220   :  { %v612_v55 = vmul.f32 -1.442695, %v369_v53  ;;  %v785_v56 = vpop.f32.mrb[2].mxu1  ;;  %v546_v53 = vld [vmem:[#allocation2 + $0x18] sm:$0xff] }
 0x221   :  { %875 = vpow2.f32 %v613_v54  ;;  %v384_v57 = vadd.f32 %v785_v56, %v1172_v49  ;;  %v378_v58 = vpop.f32.mrb[3].mxu1  ;;  %v545_v56 = vld [vmem:[#allocation2 + $0x10] sm:$0xff] }
 0x222   :  { %877 = vpow2.f32 %v612_v55  ;;  %v379_v59 = vadd.f32 %v1172_v49, %v378_v58 }
 0x223   :  { %v615_v60 = vmul.f32 -1.442695, %v384_v57 }
 0x224   :  { %v614_v61 = vmul.f32 -1.442695, %v379_v59  ;;  %v788_v62 = vpop.f32.mrb[4].mxu1 }
 0x225   :  { %879 = vpow2.f32 %v615_v60  ;;  %v394_v63 = vadd.f32 %v788_v62, %v1172_v49  ;;  %v388_v0 = vpop.f32.mrb[5].mxu1 }
 0x226   :  { %881 = vpow2.f32 %v614_v61  ;;  %v389_v1 = vadd.f32 %v1172_v49, %v388_v0 }
 0x227   :  { %v617_v2 = vmul.f32 -1.442695, %v394_v63 }
 0x228   :  { %v616_v3 = vmul.f32 -1.442695, %v389_v1  ;;  %v791_v4 = vpop.f32.mrb[6].mxu1 }
 0x229   :  { %883 = vpow2.f32 %v617_v2  ;;  %v404_v5 = vadd.f32 %v791_v4, %v1172_v49  ;;  %v398_v6 = vpop.f32.mrb[7].mxu1  ;;  %v548_v2 = vld [vmem:[#allocation2 + $0x28] sm:$0xff] }
 0x22a   :  { %885 = vpow2.f32 %v616_v3  ;;  %v399_v7 = vadd.f32 %v1172_v49, %v398_v6 }
 0x22b   :  { %v876_v8 = vpop.eup %875  ;;  %v619_v9 = vmul.f32 -1.442695, %v404_v5 }
 0x22c   :  { %v878_v10 = vpop.eup %877  ;;  %v496_v11 = vadd.f32 1.0, %v876_v8  ;;  %v618_v12 = vmul.f32 -1.442695, %v399_v7  ;;  %v794_v13 = vpop.f32.mrb[8].mxu1 }
 0x22d   :  { %v495_v14 = vadd.f32 1.0, %v878_v10  ;;  %887 = vpow2.f32 %v619_v9  ;;  %v414_v15 = vadd.f32 %v794_v13, %v1172_v49  ;;  %v408_v16 = vpop.f32.mrb[9].mxu1 }
 0x22e   :  { %889 = vrcp.f32 %v496_v11  ;;  %v409_v17 = vadd.f32 %v1172_v49, %v408_v16  ;;  %v550_v11 = vld [vmem:[#allocation2 + $0x38] sm:$0xff] }
 0x22f   :  { %v880_v18 = vpop.eup %879  ;;  %891 = vrcp.f32 %v495_v14  ;;  %v621_v19 = vmul.f32 -1.442695, %v414_v15 }
 0x230   :  { %v882_v20 = vpop.eup %881  ;;  %v498_v21 = vadd.f32 1.0, %v880_v18  ;;  %893 = vpow2.f32 %v618_v12  ;;  %v620_v22 = vmul.f32 -1.442695, %v409_v17  ;;  %v797_v23 = vpop.f32.mrb[10].mxu1  ;;  %v549_v18 = vld [vmem:[#allocation2 + $0x30] sm:$0xff] }
 0x231   :  { %v497_v24 = vadd.f32 1.0, %v882_v20  ;;  %895 = vpow2.f32 %v621_v19  ;;  %v424_v25 = vadd.f32 %v797_v23, %v1172_v49  ;;  %v418_v26 = vpop.f32.mrb[11].mxu1  ;;  %v552_v19 = vld [vmem:[#allocation2 + $0x48] sm:$0xff] }
 0x232   :  { %897 = vrcp.f32 %v498_v21  ;;  %v419_v27 = vadd.f32 %v1172_v49, %v418_v26  ;;  %v551_v26 = vld [vmem:[#allocation2 + $0x40] sm:$0xff] }
 0x233   :  { %v884_v28 = vpop.eup %883  ;;  %899 = vrcp.f32 %v497_v24  ;;  %v623_v29 = vmul.f32 -1.442695, %v424_v25 }
 0x234   :  { %v886_v30 = vpop.eup %885  ;;  %v500_v31 = vadd.f32 1.0, %v884_v28  ;;  %901 = vpow2.f32 %v620_v22  ;;  %v622_v32 = vmul.f32 -1.442695, %v419_v27  ;;  %v800_v33 = vpop.f32.mrb[12].mxu1  ;;  %v554_v28 = vld [vmem:[#allocation2 + $0x58] sm:$0xff] }
 0x235   :  { %v499_v34 = vadd.f32 1.0, %v886_v30  ;;  %903 = vpow2.f32 %v623_v29  ;;  %v434_v35 = vadd.f32 %v800_v33, %v1172_v49  ;;  %v428_v36 = vpop.f32.mrb[13].mxu1 }
 0x236   :  { %905 = vrcp.f32 %v500_v31  ;;  %v429_v38 = vadd.f32 %v1172_v49, %v428_v36  ;;  %v556_v36 = vld [vmem:[#allocation2 + $0x68] sm:$0xff] }
 0x237   :  { %v888_v39 = vpop.eup %887  ;;  %907 = vrcp.f32 %v499_v34  ;;  %v625_v41 = vmul.f32 -1.442695, %v434_v35  ;;  %v553_v35 = vld [vmem:[#allocation2 + $0x50] sm:$0xff] }
 0x238   :  { %v890_v42 = vpop.eup %889  ;;  %v502_v43 = vadd.f32 1.0, %v888_v39  ;;  %909 = vpow2.f32 %v622_v32  ;;  %v624_v44 = vmul.f32 -1.442695, %v429_v38  ;;  %v803_v45 = vpop.f32.mrb[14].mxu1 }
 0x239   :  { %v892_v46 = vpop.eup %891  ;;  %v560_v47 = vmul.f32 %v890_v42, %v544_v37  ;;  %911 = vpow2.f32 %v625_v41  ;;  %v444_v48 = vadd.f32 %v803_v45, %v1172_v49  ;;  %v438_v50 = vpop.f32.mrb[15].mxu1  ;;  %v557_v45 = vld [vmem:[#allocation2 + $0x70] sm:$0xff] }
 0x23a   :  { %v894_v51 = vpop.eup %893  ;;  %v559_v52 = vmul.f32 %v892_v46, %v543_v40  ;;  %913 = vrcp.f32 %v502_v43  ;;  %v439_v54 = vadd.f32 %v1172_v49, %v438_v50  ;;  %v547_v49 = vld [vmem:[#allocation2 + $0x20] sm:$0xff] }
 0x23b   :  { %v896_v55 = vpop.eup %895  ;;  %576 = vst [vmem:[#allocation10 + $0x8] sm:$0xff] %v560_v47  ;;  %v501_v57 = vadd.f32 1.0, %v894_v51  ;;  %915 = vpow2.f32 %v624_v44  ;;  %v627_v58 = vmul.f32 -1.442695, %v444_v48  ;;  %v555_v40 = vld [vmem:[#allocation2 + $0x60] sm:$0xff]  ;;  %v558_v44 = vld [vmem:[#allocation2 + $0x78] sm:$0xff] }
 0x23c   :  { %v898_v59 = vpop.eup %897  ;;  %575 = vst [vmem:[#allocation10] sm:$0xff] %v559_v52  ;;  %v504_v60 = vadd.f32 1.0, %v896_v55  ;;  %v626_v61 = vmul.f32 -1.442695, %v439_v54 }
 0x23d   :  { %v900_v62 = vpop.eup %899  ;;  %v562_v63 = vmul.f32 %v898_v59, %v546_v53  ;;  %917 = vrcp.f32 %v501_v57 }
 0x23e   :  { %v902_v0 = vpop.eup %901  ;;  %v561_v1 = vmul.f32 %v900_v62, %v545_v56  ;;  %919 = vrcp.f32 %v504_v60 }
 0x23f   :  { %v904_v3 = vpop.eup %903  ;;  %578 = vst [vmem:[#allocation10 + $0x18] sm:$0xff] %v562_v63  ;;  %v503_v4 = vadd.f32 1.0, %v902_v0  ;;  %921 = vpow2.f32 %v627_v58 }
 0x240   :  { %v906_v5 = vpop.eup %905  ;;  %577 = vst [vmem:[#allocation10 + $0x10] sm:$0xff] %v561_v1  ;;  %v506_v6 = vadd.f32 1.0, %v904_v3  ;;  %923 = vpow2.f32 %v626_v61 }
 0x241   :  { %v908_v7 = vpop.eup %907  ;;  %v564_v8 = vmul.f32 %v906_v5, %v548_v2  ;;  %925 = vrcp.f32 %v503_v4 }
 0x242   :  { %v910_v9 = vpop.eup %909  ;;  %v563_v10 = vmul.f32 %v908_v7, %v547_v49  ;;  %927 = vrcp.f32 %v506_v6 }
 0x243   :  { %v912_v12 = vpop.eup %911  ;;  %580 = vst [vmem:[#allocation10 + $0x28] sm:$0xff] %v564_v8  ;;  %v505_v13 = vadd.f32 1.0, %v910_v9 }
 0x244   :  { %v914_v14 = vpop.eup %913  ;;  %579 = vst [vmem:[#allocation10 + $0x20] sm:$0xff] %v563_v10  ;;  %v508_v15 = vadd.f32 1.0, %v912_v12 }
 0x245   :  { %v916_v16 = vpop.eup %915  ;;  %v566_v17 = vmul.f32 %v914_v14, %v550_v11  ;;  %929 = vrcp.f32 %v505_v13 }
 0x246   :  { %931 = vrcp.f32 %v508_v15  ;;  %v507_v20 = vadd.f32 1.0, %v916_v16 }
 0x247   :  { %v918_v21 = vpop.eup %917  ;;  %582 = vst [vmem:[#allocation10 + $0x38] sm:$0xff] %v566_v17 }
 0x248   :  { %v920_v22 = vpop.eup %919  ;;  %v565_v23 = vmul.f32 %v918_v21, %v549_v18  ;;  %933 = vrcp.f32 %v507_v20 }
 0x249   :  { %v922_v24 = vpop.eup %921  ;;  %v568_v25 = vmul.f32 %v920_v22, %v552_v19 }
 0x24a   :  { %v924_v27 = vpop.eup %923  ;;  %581 = vst [vmem:[#allocation10 + $0x30] sm:$0xff] %v565_v23  ;;  %v510_v29 = vadd.f32 1.0, %v922_v24 }
 0x24b   :  { %v926_v30 = vpop.eup %925  ;;  %584 = vst [vmem:[#allocation10 + $0x48] sm:$0xff] %v568_v25  ;;  %v509_v31 = vadd.f32 1.0, %v924_v27 }
 0x24c   :  { %v928_v32 = vpop.eup %927  ;;  %v567_v33 = vmul.f32 %v926_v30, %v551_v26  ;;  %935 = vrcp.f32 %v510_v29 }
 0x24d   :  { %v570_v34 = vmul.f32 %v928_v32, %v554_v28  ;;  %937 = vrcp.f32 %v509_v31 }
 0x24e   :  { %583 = vst [vmem:[#allocation10 + $0x40] sm:$0xff] %v567_v33 }
 0x24f   :  { %v930_v37 = vpop.eup %929  ;;  %586 = vst [vmem:[#allocation10 + $0x58] sm:$0xff] %v570_v34 }
 0x250   :  { %v932_v38 = vpop.eup %931  ;;  %v569_v39 = vmul.f32 %v930_v37, %v553_v35 }
 0x251   :  { %v572_v41 = vmul.f32 %v932_v38, %v556_v36 }
 0x252   :  { %v934_v42 = vpop.eup %933  ;;  %585 = vst [vmem:[#allocation10 + $0x50] sm:$0xff] %v569_v39 }
 0x253   :  { %588 = vst [vmem:[#allocation10 + $0x68] sm:$0xff] %v572_v41  ;;  %v571_v43 = vmul.f32 %v934_v42, %v555_v40 }
 0x255   :  { %587 = vst [vmem:[#allocation10 + $0x60] sm:$0xff] %v571_v43 }
 0x256   :  { %v936_v46 = vpop.eup %935 }
 0x257   :  { %v938_v47 = vpop.eup %937  ;;  %v574_v48 = vmul.f32 %v936_v46, %v558_v44 }
 0x258   :  { %v573_v50 = vmul.f32 %v938_v47, %v557_v45 }
 0x259   :  { %590 = vst [vmem:[#allocation10 + $0x78] sm:$0xff] %v574_v48 }
 0x25a   :  { %589 = vst [vmem:[#allocation10 + $0x70] sm:$0xff] %v573_v50 }
 0x25b   :  { %595 = vsyncadd [#allocation4], 1792  ;;  %s1063_s5 = smov [#allocation10]  }
 0x25c   :  { %s596_s25 = sshll.u32 %s1063_s5, 4  ;;  %s597_s25 = int_to_ptr.vmem [resolvable:$true] %s596_s25 }
 0x25d   :  { %s1027_s26 = scalar_lea.vmem %s597_s25, 256  ;;  %s1031_s27 = scalar_lea.vmem %s597_s25, 2048 }
 0x25e   :  { %p1028_p4 = scmp.ne.s32.totalorder %s597_s25, %s1027_s26  ;;  %p1032_p5 = scmp.lt.s32.totalorder %s597_s25, %s597_s25 }
 0x25f   :  { %p1033_p6 = scmp.lt.s32.totalorder %s1031_s27, %s1027_s26 }
 0x261   :  { %p1034_p7 = por %p1033_p6, %p1032_p5 }
 0x263   :  { %p1035_p8 = pnand %p1034_p7, %p1028_p4 }
 0x265   :  { %1038 = shalt.err (!%p1035_p8)
}
 0x266   :  { %s1039_s30 = scalar_lea.hbm %s1211_s6, 256 }
 0x267   :  { %p1040_p9 = scmp.ne.s32.totalorder %s1211_s6, %s1039_s30  ;;  %p1043_p10 = scmp.lt.u32.totalorder %s1039_s30, %s1211_s6 }
 0x269   :  { %p1045_p11 = pnand %p1043_p10, %p1040_p9 }
 0x26b   :  { %1048 = shalt.err (!%p1045_p11)
}
 0x26c   :  { %602 = dma.vmem_to_hbm [thread:$0]  %s597_s25, 256, %s1211_s6, [#allocation4], %s1058_s8, %s1058_s8, %s1059_s9  }
 0x26d   :  { %1055 = dma.done.wait [#allocation4], 2048  }
 0x26e   :  { %1056 = vsyncadd [#allocation4], 4294965248 }
 0x26f   :  { %606 = vsyncpa [#allocation3], 1 }
 0x270   :  { %607 = vsyncpa [#allocation6], 1 }
 0x271   :  { %608 = vsyncpa [#allocation9], 1 }
 0x272   :  { %609 = vsyncpa [#allocation4], 1 }

</bundles_post_ra>
